<compile_context>
chip_gen: v7x
topology: tpu7x:2x2x1
jax: 0.10.0
libtpu: 0.0.40
codegen_flags: <defaults>
</compile_context>

<pallas_src>
import jax
import jax.numpy as jnp
from jax.experimental import pallas as pl
from jax.experimental.pallas import tpu as pltpu

_LANE = 128
_SUBLANE = 8


def _round_up(x, m):
    return ((x + m - 1) // m) * m


def node_update_kernel(h_ref, agg_ref, w_ref, b_ref, o_ref):
    # Fused: (h + agg_history) @ W + b, then ReLU.
    x = h_ref[...] + agg_ref[...]                                    # VPU add
    y = jnp.dot(x, w_ref[...], preferred_element_type=jnp.float32)   # MXU
    y = y + b_ref[...]                                               # bias bcast
    o_ref[...] = jnp.maximum(y, 0.0).astype(o_ref.dtype)             # ReLU


def node_update(h, agg_h, weight_t, bias, *, tm=512):
    """Fused NodeUpdate forward (train path, dropout=0, concat=False).

    h, agg_h : (N, in_feats)           float32
    weight_t : (in_feats, out_feats)   float32  (transposed nn.Linear weight)
    bias     : (out_feats,)            float32
    returns  : (N, out_feats)          float32
    """
    N, in_feats = h.shape
    out_feats = weight_t.shape[1]
    dtype = h.dtype
    itemsize = jnp.dtype(dtype).itemsize

    # ---- lane-dense output: pad out_feats to a multiple of 128 -------------
    out_pad = _round_up(out_feats, _LANE)
    if out_pad != out_feats:
        weight_t = jnp.pad(weight_t, ((0, 0), (0, out_pad - out_feats)))
        bias = jnp.pad(bias, (0, out_pad - out_feats))

    # ---- tile-size selection ------------------------------------------------
    # (a) keep >=2 grid steps when N allows (v7x has 2 TensorCores per chip).
    tm = min(tm, max(_LANE, _round_up(pl.cdiv(N, 2), _LANE)))
    # (b) VMEM budget: double-buffered (h + agg + out) tiles plus the resident
    #     weight/bias must stay under ~20 MiB (safe on all of v5e/v6e/v7x).
    budget = 20 * 1024 * 1024
    fixed = 2 * (in_feats * out_pad + out_pad) * itemsize      # W + bias buffers
    per_row = 2 * (2 * in_feats + out_pad) * itemsize          # 2 bufs per tile row
    tm_cap = max(_LANE, ((budget - fixed) // per_row) // _LANE * _LANE)
    tm = max(min(tm, tm_cap), _SUBLANE)

    # ---- pad N to a multiple of tm so no trailing rows are dropped ----------
    n_pad = _round_up(N, tm)
    if n_pad != N:
        h = jnp.pad(h, ((0, n_pad - N), (0, 0)))
        agg_h = jnp.pad(agg_h, ((0, n_pad - N), (0, 0)))

    bias2d = bias.reshape(1, out_pad)
    grid = (n_pad // tm,)

    cost = pl.CostEstimate(
        flops=2 * N * in_feats * out_feats,
        transcendentals=0,
        bytes_accessed=itemsize * (N * (2 * in_feats + out_feats)
                                   + in_feats * out_feats + out_feats),
    )

    out = pl.pallas_call(
        node_update_kernel,
        out_shape=jax.ShapeDtypeStruct((n_pad, out_pad), dtype),
        grid_spec=pltpu.PrefetchScalarGridSpec(
            num_scalar_prefetch=0,
            grid=grid,
            in_specs=[
                pl.BlockSpec((tm, in_feats), lambda i: (i, 0)),         # h tile
                pl.BlockSpec((tm, in_feats), lambda i: (i, 0)),         # agg tile
                pl.BlockSpec((in_feats, out_pad), lambda i: (0, 0)),    # W (resident)
                pl.BlockSpec((1, out_pad), lambda i: (0, 0)),           # bias
            ],
            out_specs=pl.BlockSpec((tm, out_pad), lambda i: (i, 0)),
        ),
        compiler_params=pltpu.CompilerParams(
            dimension_semantics=("parallel",),
            vmem_limit_bytes=32 * 1024 * 1024,
        ),
        cost_estimate=cost,
    )(h, agg_h, weight_t, bias2d)

    # Slice off row/lane padding.
    return out[:N, :out_feats]


def node_update_ref(h, agg_h, weight_t, bias):
    # Pure-JAX reference of the same forward.
    x = h + agg_h
    y = x @ weight_t + bias
    return jnp.maximum(y, 0.0)


if __name__ == "__main__":
    # Small, (8,128)-friendly shapes: 256 nodes, in_feats=128, out_feats=128.
    N, IN_FEATS, OUT_FEATS = 256, 128, 128

    key = jax.random.PRNGKey(0)
    k_h, k_agg, k_w, k_b = jax.random.split(key, 4)

    h = jax.random.normal(k_h, (N, IN_FEATS), dtype=jnp.float32)
    agg_h = jax.random.normal(k_agg, (N, IN_FEATS), dtype=jnp.float32)

    # Deterministic nn.Linear-style init: U(-bound, bound), bound = 1/sqrt(in_feats).
    bound = 1.0 / (IN_FEATS ** 0.5)
    weight = jax.random.uniform(k_w, (OUT_FEATS, IN_FEATS), jnp.float32,
                                minval=-bound, maxval=bound)
    bias = jax.random.uniform(k_b, (OUT_FEATS,), jnp.float32,
                              minval=-bound, maxval=bound)
    weight_t = weight.T  # (in_feats, out_feats) for the kernel

    # TODO(synk): dropout>0 (fuse in-kernel via pltpu.prng_seed/prng_random_bits
    # between the add and the matmul), and the `concat` / `test` (h*norm)
    # branches are not implemented; this kernel covers the dropout=0,
    # test=False, concat=False, activation=ReLU path.

    out = node_update(h, agg_h, weight_t, bias)
    out = jax.block_until_ready(out)

    ref = node_update_ref(h, agg_h, weight_t, bias)
    assert out.shape == ref.shape, "shape mismatch vs reference"
    assert jnp.allclose(out, ref, atol=1e-4, rtol=1e-4), "mismatch vs reference"

    print("KERNEL_OK")
</pallas_src>

<mosaic_0001>
module attributes {stable_mosaic.version = 11 : i64} {
  func.func @node_update_kernel(%arg0: i32, %arg1: memref<128x128xf32, #tpu.memory_space<vmem>>, %arg2: memref<128x128xf32, #tpu.memory_space<vmem>>, %arg3: memref<128x128xf32, #tpu.memory_space<vmem>>, %arg4: memref<1x128xf32, #tpu.memory_space<vmem>>, %arg5: memref<128x128xf32, #tpu.memory_space<vmem>>) attributes {dimension_semantics = [#tpu.dimension_semantics<parallel>], iteration_bounds = array<i64: 2>, scalar_prefetch = 0 : i64, scratch_operands = 0 : i64, tpu.core_type = #tpu.core_type<tc>, window_params = [{transform_indices = @transform_0, window_bounds = array<i64: 128, 128>}, {transform_indices = @transform_1, window_bounds = array<i64: 128, 128>}, {pipeline_mode = #tpu.pipeline_mode<synchronous>, transform_indices = @transform_2, window_bounds = array<i64: 128, 128>}, {pipeline_mode = #tpu.pipeline_mode<synchronous>, transform_indices = @transform_3, window_bounds = array<i64: 1, 128>}, {transform_indices = @transform_4, window_bounds = array<i64: 128, 128>}]} {
    %c0 = arith.constant 0 : index
    %c0_0 = arith.constant 0 : index
    %0 = vector.load %arg1[%c0, %c0_0] : memref<128x128xf32, #tpu.memory_space<vmem>>, vector<128x128xf32>
    %c0_1 = arith.constant 0 : index
    %c0_2 = arith.constant 0 : index
    %1 = vector.load %arg2[%c0_1, %c0_2] : memref<128x128xf32, #tpu.memory_space<vmem>>, vector<128x128xf32>
    %2 = arith.addf %0, %1 : vector<128x128xf32>
    %c0_3 = arith.constant 0 : index
    %c0_4 = arith.constant 0 : index
    %3 = vector.load %arg3[%c0_3, %c0_4] : memref<128x128xf32, #tpu.memory_space<vmem>>, vector<128x128xf32>
    %cst = arith.constant dense<0.000000e+00> : vector<128x128xf32>
    %4 = tpu.matmul %2, %3, %cst {dimension_numbers = #tpu.dot_dimension_numbers<[1], [0], [0], [1], [0, 0, 1, 1], [], []>} : vector<128x128xf32>, vector<128x128xf32>, vector<128x128xf32> -> vector<128x128xf32>
    %c0_5 = arith.constant 0 : index
    %c0_6 = arith.constant 0 : index
    %5 = vector.load %arg4[%c0_5, %c0_6] : memref<1x128xf32, #tpu.memory_space<vmem>>, vector<1x128xf32>
    %6 = vector.broadcast %5 : vector<1x128xf32> to vector<128x128xf32>
    %7 = arith.addf %4, %6 : vector<128x128xf32>
    %cst_7 = arith.constant 0.000000e+00 : f32
    %8 = vector.broadcast %cst_7 : f32 to vector<128x128xf32>
    %9 = arith.maximumf %7, %8 : vector<128x128xf32>
    %c0_8 = arith.constant 0 : index
    %c0_9 = arith.constant 0 : index
    %10 = vector.load %arg5[%c0_8, %c0_9] : memref<128x128xf32, #tpu.memory_space<vmem>>, vector<128x128xf32>
    tpu.vector_store %arg5[%c0_8, %c0_9], %9 {strides = array<i32>} : memref<128x128xf32, #tpu.memory_space<vmem>>, vector<128x128xf32>,
    return
  }
  func.func @transform_0(%arg0: i32) -> (i32, i32) {
    %c0_i32 = arith.constant 0 : i32
    %c0_i32_0 = arith.constant 0 : i32
    return %arg0, %c0_i32 : i32, i32
  }
  func.func @transform_1(%arg0: i32) -> (i32, i32) {
    %c0_i32 = arith.constant 0 : i32
    %c0_i32_0 = arith.constant 0 : i32
    return %arg0, %c0_i32 : i32, i32
  }
  func.func @transform_2(%arg0: i32) -> (i32, i32) {
    %c0_i32 = arith.constant 0 : i32
    %c0_i32_0 = arith.constant 0 : i32
    %c0_i32_1 = arith.constant 0 : i32
    return %c0_i32, %c0_i32_0 : i32, i32
  }
  func.func @transform_3(%arg0: i32) -> (i32, i32) {
    %c0_i32 = arith.constant 0 : i32
    %c0_i32_0 = arith.constant 0 : i32
    %c0_i32_1 = arith.constant 0 : i32
    return %c0_i32, %c0_i32_0 : i32, i32
  }
  func.func @transform_4(%arg0: i32) -> (i32, i32) {
    %c0_i32 = arith.constant 0 : i32
    %c0_i32_0 = arith.constant 0 : i32
    return %arg0, %c0_i32 : i32, i32
  }
}

</mosaic_0001>

<bundles_post_ra>
// kernel: tpu_custom_call.1
= control target key start
LH: loop header
LB: loop body
LE: loop exit
PB: predicated region body
PF: predicated region fallthrough
CT: control target
= control target key end

     0   :  { %s1379_s0 = inlined_call_operand.hbm [shape: f32[256,128], index: 0, kind: input, shape index: {}]   ;;  %s1380_s1 = inlined_call_operand.hbm [shape: f32[256,128], index: 1, kind: input, shape index: {}]   ;;  %s1381_s2 = inlined_call_operand.hbm [shape: f32[128,128], index: 2, kind: input, shape index: {}]   ;;  %s1382_s3 = inlined_call_operand.vmem [shape: f32[1,128], index: 3, kind: input, shape index: {}]   ;;  %s1383_s4 = inlined_call_operand.hbm [shape: f32[256,128], index: 4, kind: output, shape index: {}]  }
   0x1   :  { %1391 = sst [smem:[#allocation14_spill]] %s1379_s0 }
   0x2   :  { %1392 = sst [smem:[#allocation15_spill]] %s1381_s2 }
   0x3   :  { %9 = vsyncpa [#allocation3], 0 }
   0x4   :  { %11 = vsyncpa [#allocation3 + $0x1], 0 }
   0x5   :  { %12 = vsyncpa [#allocation6], 0 }
   0x6   :  { %14 = vsyncpa [#allocation6 + $0x1], 0 }
   0x7   :  { %15 = vsyncpa [#allocation4], 0 }
   0x8   :  { %17 = vsyncpa [#allocation4 + $0x1], 0  ;;  %s1063_s15 = smov 0   ;;  %s1065_s16 = smov 0  }
   0x9   :  { %s1067_s17 = smov 0   ;;  %s1069_s18 = smov 0  }
   0xa LB: > { %s1084_s19 = sadd.s32 4294967295, %s1028_s18   ;;  %s640_s20 = sadd.s32 4294967294, %s1028_s18   ;;  %s1028_s18 = sphi %s1069_s18, %s1415_s18   ;;  %s1024_s17 = sphi %s1067_s17, %s1414_s17   ;;  %s1020_s16 = sphi %s1065_s16, %s1413_s16   ;;  %s1016_s15 = sphi %s1063_s15, %s1412_s15  }
   0xb   : > { %p43_p0 = scmp.ne.s32.totalorder %s1020_s16, %s1016_s15  ;;  %p1384_p1 = scmp.eq.s32.totalorder %s1084_s19, 0 }
   0xc   : > { %p141_p3 = scmp.eq.s32.totalorder %s640_s20, 1  ;;  %p641_p5 = scmp.ge.s32.totalorder %s1028_s18, 1 }
   0xd   : > { %p1093_p4 = por %p1384_p1, %p43_p0  ;;  %p148_p7 = scmp.lt.s32.totalorder %s1028_s18, 3 }
   0xe   : > { %p1098_p6 = por %p141_p3, %p43_p0  ;;  %s1030_s24 = smov [#allocation7]  }
   0xf   : > { %s1393_s21 = scalar_select %p1093_p4, 1, 0 }
  0x10   : > { %s1394_s22 = scalar_select %p1098_p6, 1, 0 }
  0x11   : > { %p1103_p8 = pnand %p641_p5, %p148_p7  ;;  %s160_s25 = sshll.u32 %s1030_s24, 4  ;;  %s1107_s25 = int_to_ptr.vmem [resolvable:$true] %s160_s25 }
  0x12   : > { %s1119_s27 = sadd.s32 1, %s1028_s18   ;;  %s30_s28 = sadd.s32 1, %s1024_s17 }
  0x13   : > { %s1395_s23 = scalar_select %p1103_p8, 1, 0 }
  0x14   : > { %p810_p9 = pneg %p1103_p8  ;;  %s27_s29 = ssub.s32 %s1028_s18, %s1119_s27 }
  0x15   : > { %s1397_s2 = sld [smem:[#allocation15_spill]] }
  0x16   : > { %p1114_p11 = pnand %p810_p9, %p1384_p1 }
  0x18   : > { %p868_p13 = pneg %p1114_p11 }
  0x1b   : > { %s866_s6 = scalar_lea.hbm %s1397_s2, 2048 }
  0x1c   : > { %p867_p12 = scmp.ne.s32.totalorder %s1397_s2, %s866_s6  ;;  %p873_p5 = scmp.lt.u32.totalorder %s866_s6, %s1397_s2 }
  0x1e   : > { %p869_p0 = pnand %p868_p13, %p867_p12 }
  0x20   : > { %p870_p3 = pneg %p869_p0 }
  0x22   : > { %p875_p7 = pnand %p873_p5, %p870_p3 }
  0x24   : > { %878 = shalt.err (!%p875_p7)
}
  0x25   : > { %s879_s11 = scalar_lea.vmem %s1107_s25, 2048  ;;  %p887_p2 = scmp.lt.s32.totalorder %s1107_s25, %s1107_s25 }
  0x26   : > { %p880_p9 = scmp.ne.s32.totalorder %s1107_s25, %s879_s11  ;;  %p888_p6 = scmp.lt.s32.totalorder %s879_s11, %s879_s11 }
  0x28   : > { %p882_p10 = pnand %p880_p9, %p868_p13  ;;  %p889_p4 = por %p888_p6, %p887_p2 }
  0x2a   : > { %p883_p1 = pneg %p882_p10 }
  0x2c   : > { %p890_p8 = pnand %p889_p4, %p883_p1 }
  0x2e   : > { %893 = shalt.err (!%p890_p8)
}
  0x2f   : > { %s1387_s12 = smov 128   ;;  %s1389_s13 = smov 8  }
  0x30   : > { %813 = dma.hbm_to_vmem [thread:$0]  (!%p1114_p11), %s1397_s2, 2048, %s1107_s25, [#allocation6], %s1387_s12, %s1387_s12, %s1389_s13  }
  0x31   : > { %p28_p1 = scmp.eq.s32.totalorder %s27_s29, 0  ;;  %p37_p2 = scmp.ne.s32.totalorder %s1024_s17, %s1020_s16 }
  0x32   : > { %p38_p4 = scmp.eq.s32.totalorder %s1028_s18, 0  ;;  %p826_p6 = scmp.lt.s32.totalorder %s1028_s18, 2 }
  0x33   : > { %s1153_s24 = scalar_select %p28_p1, %s1024_s17, %s30_s28  }
  0x34   : > { %p39_p8 = por %p38_p4, %p37_p2  ;;  %p1399_p10 = scmp.eq.s32.totalorder %s1084_s19, 1 }
  0x35   : > { %1398 = sst [smem:[#allocation13_spill]] %s1153_s24  ;;  %s177_s26 = sand.u32 1, %s1024_s17  }
  0x36   : > { %p1157_p12 = por %p1399_p10, %p37_p2  ;;  %s661_s5 = sshll.u32 %s1028_s18, 11 }
  0x37   : > { %s1163_s6 = sshll.u32 %s177_s26, 7  ;;  %s1401_s0 = sld [smem:[#allocation14_spill]] }
  0x38   : > { %s181_s28 = scalar_lea.vmem [#allocation2], %s1163_s6  ;;  %p1171_p11 = pnand %p826_p6, %p39_p8 }
  0x39   : > { %s188_s29 = sshll.u32 %s181_s28, 4  ;;  %s1180_s14 = scalar_lea.hbm %s1380_s1, %s661_s5  ;;  %s1175_s29 = int_to_ptr.vmem [resolvable:$true] %s188_s29 }
  0x3a   : > { %s1182_s20 = scalar_lea.sflag [#allocation3], %s177_s26  ;;  %p896_p0 = pneg %p1171_p11 }
  0x3d   : > { %s1168_s25 = scalar_lea.hbm %s1401_s0, %s661_s5  ;;  %s899_s12 = scalar_lea.hbm %s1401_s0, 4096 }
  0x3e   : > { %s894_s7 = scalar_lea.hbm %s1168_s25, 2048  ;;  %p900_p7 = scmp.lt.u32.totalorder %s1168_s25, %s1401_s0 }
  0x3f   : > { %p895_p13 = scmp.ne.s32.totalorder %s1168_s25, %s894_s7  ;;  %p901_p9 = scmp.lt.u32.totalorder %s899_s12, %s894_s7 }
  0x40   : > { %p903_p2 = scmp.lt.u32.totalorder %s894_s7, %s1168_s25 }
  0x41   : > { %p897_p3 = pnand %p896_p0, %p895_p13  ;;  %p902_p1 = por %p901_p9, %p900_p7 }
  0x43   : > { %p898_p5 = pneg %p897_p3  ;;  %p904_p4 = por %p903_p2, %p902_p1 }
  0x45   : > { %p905_p6 = pnand %p904_p4, %p898_p5 }
  0x47   : > { %908 = shalt.err (!%p905_p6)
}
  0x48   : > { %s909_s26 = scalar_lea.vmem %s1175_s29, 2048  ;;  %s1033_s5 = smov [#allocation2]  }
  0x49   : > { %p910_p8 = scmp.ne.s32.totalorder %s1175_s29, %s909_s26  ;;  %s914_s10 = sshll.u32 %s1033_s5, 4  ;;  %s915_s10 = int_to_ptr.vmem [resolvable:$false] %s914_s10 }
  0x4a   : > { %s916_s2 = scalar_lea.vmem %s915_s10, 4096  ;;  %p917_p3 = scmp.lt.s32.totalorder %s1175_s29, %s915_s10 }
  0x4b   : > { %p912_p10 = pnand %p910_p8, %p896_p0  ;;  %p918_p7 = scmp.lt.s32.totalorder %s916_s2, %s909_s26 }
  0x4d   : > { %p913_p13 = pneg %p912_p10  ;;  %p919_p9 = por %p918_p7, %p917_p3 }
  0x4f   : > { %p920_p1 = pnand %p919_p9, %p913_p13 }
  0x51   : > { %923 = shalt.err (!%p920_p1)
}
  0x52   : > { %s1403_s12 = smov 8   ;;  %s1404_s13 = smov 128  }
  0x53   : > { %817 = dma.hbm_to_vmem [thread:$0]  (!%p1171_p11), %s1168_s25, 2048, %s1175_s29, %s1182_s20, %s1404_s13, %s1404_s13, %s1403_s12  }
  0x54   : > { %s202_s11 = scalar_lea.vmem [#allocation5], %s1163_s6  ;;  %s198_s8 = sand.u32 1, %s1028_s18  }
  0x55   : > { %s209_s7 = sshll.u32 %s202_s11, 4  ;;  %s1217_s28 = scalar_lea.sflag [#allocation6], %s198_s8  ;;  %s1215_s7 = int_to_ptr.vmem [resolvable:$true] %s209_s7 }
  0x56   : > { %s924_s26 = scalar_lea.hbm %s1180_s14, 2048  ;;  %s929_s2 = scalar_lea.hbm %s1380_s1, 4096 }
  0x57   : > { %p925_p5 = scmp.ne.s32.totalorder %s1180_s14, %s924_s26  ;;  %p930_p6 = scmp.lt.u32.totalorder %s1180_s14, %s1380_s1 }
  0x58   : > { %p931_p8 = scmp.lt.u32.totalorder %s929_s2, %s924_s26  ;;  %p933_p13 = scmp.lt.u32.totalorder %s924_s26, %s1180_s14 }
  0x59   : > { %p927_p2 = pnand %p925_p5, %p896_p0 }
  0x5a   : > { %p932_p10 = por %p931_p8, %p930_p6 }
  0x5b   : > { %p928_p4 = pneg %p927_p2 }
  0x5c   : > { %p934_p3 = por %p933_p13, %p932_p10 }
  0x5e   : > { %p935_p7 = pnand %p934_p3, %p928_p4 }
  0x60   : > { %938 = shalt.err (!%p935_p7)
}
  0x61   : > { %s939_s6 = scalar_lea.vmem %s1215_s7, 2048  ;;  %s1034_s25 = smov [#allocation5]  }
  0x62   : > { %p940_p9 = scmp.ne.s32.totalorder %s1215_s7, %s939_s6  ;;  %s944_s29 = sshll.u32 %s1034_s25, 4  ;;  %s945_s29 = int_to_ptr.vmem [resolvable:$false] %s944_s29 }
  0x63   : > { %s946_s0 = scalar_lea.vmem %s945_s29, 4096  ;;  %p947_p2 = scmp.lt.s32.totalorder %s1215_s7, %s945_s29 }
  0x64   : > { %p942_p1 = pnand %p940_p9, %p896_p0  ;;  %p948_p6 = scmp.lt.s32.totalorder %s946_s0, %s939_s6 }
  0x66   : > { %p943_p5 = pneg %p942_p1  ;;  %p949_p8 = por %p948_p6, %p947_p2 }
  0x68   : > { %p950_p10 = pnand %p949_p8, %p943_p5 }
  0x6a   : > { %953 = shalt.err (!%p950_p10)
}
  0x6b   : > { %820 = dma.hbm_to_vmem [thread:$0]  (!%p1171_p11), %s1180_s14, 2048, %s1215_s7, %s1217_s28, %s1404_s13, %s1404_s13, %s1403_s12  }
  0x6c   : > { %p1405_p0 = scmp.ne.s32.totalorder %s1395_s23, 0 }
  0x6d   : > { %s1249_s24 = sand.u32 (!%p1405_p0), 1, %s1020_s16   ;;  %p1406_p4 = scmp.ne.s32.totalorder (!%p1405_p0), %s1393_s21, 0 }
  0x6e   : > { %221 = sbr.rel (%p1405_p0) target bundleno = 403 (0x193), region = 36  ;;  %s1252_s20 = sshll.u32 (!%p1405_p0), %s1249_s24, 7 }
  0x6f   : > { %s224_s9 = scalar_lea.sflag (!%p1405_p0), [#allocation3], %s1249_s24  ;;  %s1256_s11 = scalar_lea.vmem (!%p1405_p0), [#allocation2], %s1252_s20 }
  0x75   : > { %999 = dma.done.wait (%p1406_p4), %s224_s9, 2048  }
  0x76   : > { %1001 = vsyncadd (%p1406_p4), %s224_s9, 4294965248  ;;  %s232_s23 = sand.u32 1, %s1084_s19   ;;  %s1264_s12 = scalar_lea.vmem [#allocation5], %s1252_s20 }
  0x77   : > { %s233_s14 = scalar_lea.sflag [#allocation6], %s232_s23 }
  0x78   : > { %1003 = dma.done.wait (%p1406_p4), %s233_s14, 2048  }
  0x79   : > { %1005 = vsyncadd (%p1406_p4), %s233_s14, 4294965248  ;;  %p1407_p11 = scmp.eq.s32.totalorder %s1084_s19, 0 }
  0x7b   : > { %1007 = dma.done.wait (%p1407_p11), [#allocation6], 2048   ;;  %p1408_p13 = pmov %p1407_p11 }
  0x7c   : > { %v321_v0 = vld [vmem:[#allocation7] sm:$0xff]  ;;  %v322_v1 = vld [vmem:[#allocation7 + $0x8] sm:$0xff]  ;;  %v323_v2 = vld [vmem:[#allocation7 + $0x10] sm:$0xff]  ;;  %s1310_s7 = scalar_lea.vmem [#allocation8], %s1252_s20  ;;  %s663_s8 = sshll.u32 %s1084_s19, 11 }
  0x7d   : > { %1009 = vsyncadd (%p1408_p13), [#allocation6], 4294965248  ;;  %v752_v3 = vpack.c.bf16 %v322_v1, %v321_v0  ;;  %v324_v4 = vld [vmem:[#allocation7 + $0x18] sm:$0xff]  ;;  %v325_v6 = vld [vmem:[#allocation7 + $0x20] sm:$0xff]  ;;  %s535_s28 = sshll.u32 %s1310_s7, 4  ;;  %s1329_s5 = scalar_lea.hbm %s1383_s4, %s663_s8  ;;  %s1331_s28 = int_to_ptr.vmem [resolvable:$true] %s535_s28 }
  0x7e   : > { %v756_v5 = vpack.c.bf16 %v324_v4, %v323_v2  ;;  %v326_v7 = vld [vmem:[#allocation7 + $0x28] sm:$0xff]  ;;  %v327_v9 = vld [vmem:[#allocation7 + $0x30] sm:$0xff]  ;;  %v273_v10 = vld [vmem:[%s1256_s11] sm:$0xff]  ;;  %s522_s10 = scalar_lea.sflag [#allocation4], %s1249_s24  ;;  %s954_s2 = scalar_lea.vmem %s1331_s28, 2048 }
  0x7f   : > { %753 = vmatprep.subr.bf16.mxu0 %v752_v3  ;;  %784 = vmatprep.subr.bf16.mxu1 %v752_v3  ;;  %v760_v8 = vpack.c.bf16 %v326_v7, %v325_v6  ;;  %v289_v11 = vld [vmem:[%s1264_s12] sm:$0xff]  ;;  %v328_v12 = vld [vmem:[#allocation7 + $0x38] sm:$0xff]  ;;  %v330_v19 = vld [vmem:[#allocation7 + $0x48] sm:$0xff]  ;;  %p955_p3 = scmp.ne.s32.totalorder %s1331_s28, %s954_s2  ;;  %s1035_s6 = smov [#allocation8]  }
  0x80   : > { %755 = vmatpush3.bf16.msra.mxu0 %v752_v3  ;;  %792 = vmatpush3.bf16.msra.mxu1 %v752_v3  ;;  %v305_v13 = vadd.f32 %v289_v11, %v273_v10  ;;  %v281_v14 = vld [vmem:[%s1256_s11 + $0x40] sm:$0xff]  ;;  %v764_v17 = vpack.c.bf16 %v328_v12, %v327_v9  ;;  %v331_v21 = vld [vmem:[#allocation7 + $0x50] sm:$0xff]  ;;  %v332_v22 = vld [vmem:[#allocation7 + $0x58] sm:$0xff]  ;;  %s958_s25 = sshll.u32 %s1035_s6, 4  ;;  %s959_s25 = int_to_ptr.vmem [resolvable:$false] %s958_s25 }
  0x81   : > { %757 = vmatprep.subr.bf16.mxu0 %v756_v5  ;;  %785 = vmatprep.subr.bf16.mxu1 %v756_v5  ;;  %v297_v15 = vld [vmem:[%s1264_s12 + $0x40] sm:$0xff]  ;;  %v772_v23 = vpack.c.bf16 %v332_v22, %v331_v21  ;;  %v334_v25 = vld [vmem:[#allocation7 + $0x68] sm:$0xff]  ;;  %v335_v27 = vld [vmem:[#allocation7 + $0x70] sm:$0xff]  ;;  %p956_p7 = pnand %p955_p3, %p1157_p12  ;;  %s960_s29 = scalar_lea.vmem %s959_s25, 4096 }
  0x82   : > { %v313_v16 = vadd.f32 %v297_v15, %v281_v14  ;;  %v329_v18 = vld [vmem:[#allocation7 + $0x40] sm:$0xff]  ;;  %728 = vmatprep.mubr.f32.mxu0 %v305_v13  ;;  %v336_v28 = vld [vmem:[#allocation7 + $0x78] sm:$0xff]  ;;  %v274_v30 = vld [vmem:[%s1256_s11 + $0x8] sm:$0xff]  ;;  %p961_p1 = scmp.lt.s32.totalorder %s1331_s28, %s959_s25  ;;  %p962_p5 = scmp.lt.s32.totalorder %s960_s29, %s954_s2 }
  0x83   : > { %v768_v20 = vpack.c.bf16 %v330_v19, %v329_v18  ;;  %v333_v24 = vld [vmem:[#allocation7 + $0x60] sm:$0xff]  ;;  %v780_v29 = vpack.c.bf16 %v336_v28, %v335_v27  ;;  %v290_v31 = vld [vmem:[%s1264_s12 + $0x8] sm:$0xff]  ;;  %v275_v34 = vld [vmem:[%s1256_s11 + $0x10] sm:$0xff]  ;;  %p957_p9 = pneg %p956_p7 }
  0x84   : > { %759 = vmatpush3.bf16.msra.mxu0 %v756_v5  ;;  %793 = vmatpush3.bf16.msra.mxu1 %v756_v5  ;;  %v776_v26 = vpack.c.bf16 %v334_v25, %v333_v24  ;;  %v282_v32 = vld [vmem:[%s1256_s11 + $0x48] sm:$0xff]  ;;  %v291_v35 = vld [vmem:[%s1264_s12 + $0x10] sm:$0xff]  ;;  %v306_v38 = vadd.f32 %v290_v31, %v274_v30  ;;  %v276_v40 = vld [vmem:[%s1256_s11 + $0x18] sm:$0xff]  ;;  %p963_p2 = por %p962_p5, %p961_p1 }
  0x85   : > { %761 = vmatprep.subr.bf16.mxu0 %v760_v8  ;;  %786 = vmatprep.subr.bf16.mxu1 %v760_v8  ;;  %v298_v33 = vld [vmem:[%s1264_s12 + $0x48] sm:$0xff]  ;;  %v283_v36 = vld [vmem:[%s1256_s11 + $0x50] sm:$0xff]  ;;  %v292_v41 = vld [vmem:[%s1264_s12 + $0x18] sm:$0xff]  ;;  %v307_v42 = vadd.f32 %v291_v35, %v275_v34 }
  0x86   : > { %740 = vmatprep.mubr.f32.mxu1 %v313_v16  ;;  %v299_v37 = vld [vmem:[%s1264_s12 + $0x50] sm:$0xff]  ;;  %v314_v39 = vadd.f32 %v298_v33, %v282_v32  ;;  %v284_v44 = vld [vmem:[%s1256_s11 + $0x58] sm:$0xff]  ;;  %v277_v46 = vld [vmem:[%s1256_s11 + $0x20] sm:$0xff]  ;;  %v308_v50 = vadd.f32 %v292_v41, %v276_v40  ;;  %p964_p6 = pnand %p963_p2, %p957_p9 }
  0x87   : > { %v315_v43 = vadd.f32 %v299_v37, %v283_v36  ;;  %v300_v45 = vld [vmem:[%s1264_s12 + $0x58] sm:$0xff]  ;;  %v293_v47 = vld [vmem:[%s1264_s12 + $0x20] sm:$0xff]  ;;  %v278_v52 = vld [vmem:[%s1256_s11 + $0x28] sm:$0xff] }
  0x88   : > { %763 = vmatpush3.bf16.msra.mxu0 %v760_v8  ;;  %794 = vmatpush3.bf16.msra.mxu1 %v760_v8  ;;  %v285_v48 = vld [vmem:[%s1256_s11 + $0x60] sm:$0xff]  ;;  %v316_v51 = vadd.f32 %v300_v45, %v284_v44  ;;  %v294_v53 = vld [vmem:[%s1264_s12 + $0x28] sm:$0xff]  ;;  %v309_v54 = vadd.f32 %v293_v47, %v277_v46  ;;  %v279_v58 = vld [vmem:[%s1256_s11 + $0x30] sm:$0xff] }
  0x89   : > { %765 = vmatprep.subr.bf16.mxu0 %v764_v17  ;;  %787 = vmatprep.subr.bf16.mxu1 %v764_v17  ;;  %v301_v49 = vld [vmem:[%s1264_s12 + $0x60] sm:$0xff]  ;;  %v286_v56 = vld [vmem:[%s1256_s11 + $0x68] sm:$0xff]  ;;  %v295_v59 = vld [vmem:[%s1264_s12 + $0x30] sm:$0xff]  ;;  %v310_v62 = vadd.f32 %v294_v53, %v278_v52 }
  0x8a   : > { %v317_v55 = vadd.f32 %v301_v49, %v285_v48  ;;  %v302_v57 = vld [vmem:[%s1264_s12 + $0x68] sm:$0xff]  ;;  %v287_v60 = vld [vmem:[%s1256_s11 + $0x70] sm:$0xff]  ;;  %v280_v0 = vld [vmem:[%s1256_s11 + $0x38] sm:$0xff]  ;;  %v311_v1 = vadd.f32 %v295_v59, %v279_v58 }
  0x8b   : > { %v303_v61 = vld [vmem:[%s1264_s12 + $0x70] sm:$0xff]  ;;  %v318_v63 = vadd.f32 %v302_v57, %v286_v56  ;;  %v296_v3 = vld [vmem:[%s1264_s12 + $0x38] sm:$0xff]  ;;  %v655_v8 = vld [vmem:[%s1382_s3] ss:$0 sm:$0xff] }
  0x8c   : > { %767 = vmatpush3.bf16.msra.mxu0 %v764_v17  ;;  %795 = vmatpush3.bf16.msra.mxu1 %v764_v17  ;;  %v319_v2 = vadd.f32 %v303_v61, %v287_v60  ;;  %v288_v4 = vld [vmem:[%s1256_s11 + $0x78] sm:$0xff]  ;;  %v312_v6 = vadd.f32 %v296_v3, %v280_v0 }
  0x8d   : > { %769 = vmatprep.subr.bf16.mxu0 %v768_v20  ;;  %788 = vmatprep.subr.bf16.mxu1 %v768_v20  ;;  %v304_v5 = vld [vmem:[%s1264_s12 + $0x78] sm:$0xff] }
  0x8e   : > { %v320_v7 = vadd.f32 %v304_v5, %v288_v4 }
  0x90   : > { %771 = vmatpush3.bf16.msra.mxu0 %v768_v20  ;;  %796 = vmatpush3.bf16.msra.mxu1 %v768_v20 }
  0x91   : > { %773 = vmatprep.subr.bf16.mxu0 %v772_v23  ;;  %789 = vmatprep.subr.bf16.mxu1 %v772_v23 }
  0x94   : > { %775 = vmatpush3.bf16.msra.mxu0 %v772_v23  ;;  %797 = vmatpush3.bf16.msra.mxu1 %v772_v23 }
  0x95   : > { %777 = vmatprep.subr.bf16.mxu0 %v776_v26  ;;  %790 = vmatprep.subr.bf16.mxu1 %v776_v26 }
  0x98   : > { %779 = vmatpush3.bf16.msra.mxu0 %v776_v26  ;;  %798 = vmatpush3.bf16.msra.mxu1 %v776_v26 }
  0x99   : > { %781 = vmatprep.subr.bf16.mxu0 %v780_v29  ;;  %791 = vmatprep.subr.bf16.mxu1 %v780_v29 }
  0x9c   : > { %783 = vmatpush3.bf16.msra.mxu0 %v780_v29  ;;  %799 = vmatpush3.bf16.msra.mxu1 %v780_v29 }
  0x9f   : > { %729 = vmatmul.mubr.f32.vlgmr.msra.gmra.mrb[0].mxu0 %v306_v38  ;;  %741 = vmatmul.mubr.f32.vlgmr.msra.gmra.mrb[0].mxu1 %v314_v39 }
  0xa0   : > { %731 = vmatprep.mubr.f32.mxu0 %v307_v42  ;;  %743 = vmatprep.mubr.f32.mxu1 %v315_v43 }
  0xa3   : > { %732 = vmatmul.mubr.f32.gmra.mrb[2].mxu0 %v308_v50  ;;  %744 = vmatmul.mubr.f32.gmra.mrb[2].mxu1 %v316_v51 }
  0xa4   : > { %734 = vmatprep.mubr.f32.mxu0 %v309_v54  ;;  %746 = vmatprep.mubr.f32.mxu1 %v317_v55 }
  0xa7   : > { %735 = vmatmul.mubr.f32.gmra.mrb[4].mxu0 %v310_v62  ;;  %747 = vmatmul.mubr.f32.gmra.mrb[4].mxu1 %v318_v63 }
  0xa8   : > { %737 = vmatprep.mubr.f32.mxu0 %v311_v1  ;;  %749 = vmatprep.mubr.f32.mxu1 %v319_v2 }
  0xab   : > { %738 = vmatmul.mubr.f32.gmra.mrb[6].mxu0 %v312_v6  ;;  %750 = vmatmul.mubr.f32.gmra.mrb[6].mxu1 %v320_v7 }
 0x172   : > { %v730_v9 = vpop.f32.mrb[0].mxu0  ;;  %v742_v10 = vpop.f32.mrb[0].mxu1 }
 0x173   : > { %v416_v11 = vadd.f32 %v730_v9, %v655_v8  ;;  %v456_v12 = vadd.f32 %v742_v10, %v655_v8  ;;  %v410_v13 = vpop.f32.mrb[1].mxu0  ;;  %v450_v14 = vpop.f32.mrb[1].mxu1 }
 0x174   : > { %v411_v15 = vadd.f32 %v655_v8, %v410_v13  ;;  %v451_v16 = vadd.f32 %v655_v8, %v450_v14 }
 0x175   : > { %v490_v17 = vmax.f32 %v416_v11, 0.0  ;;  %v498_v18 = vmax.f32 %v456_v12, 0.0 }
 0x176   : > { %v489_v19 = vmax.f32 %v411_v15, 0.0  ;;  %v497_v20 = vmax.f32 %v451_v16, 0.0  ;;  %v733_v21 = vpop.f32.mrb[2].mxu0  ;;  %v745_v22 = vpop.f32.mrb[2].mxu1 }
 0x177   : > { %506 = vst [vmem:[%s1310_s7 + $0x8] sm:$0xff] %v490_v17  ;;  %514 = vst [vmem:[%s1310_s7 + $0x48] sm:$0xff] %v498_v18  ;;  %v426_v23 = vadd.f32 %v733_v21, %v655_v8  ;;  %v466_v24 = vadd.f32 %v745_v22, %v655_v8  ;;  %v420_v25 = vpop.f32.mrb[3].mxu0  ;;  %v460_v26 = vpop.f32.mrb[3].mxu1 }
 0x178   : > { %505 = vst [vmem:[%s1310_s7] sm:$0xff] %v489_v19  ;;  %513 = vst [vmem:[%s1310_s7 + $0x40] sm:$0xff] %v497_v20  ;;  %v421_v27 = vadd.f32 %v655_v8, %v420_v25  ;;  %v461_v28 = vadd.f32 %v655_v8, %v460_v26 }
 0x179   : > { %v492_v29 = vmax.f32 %v426_v23, 0.0  ;;  %v500_v30 = vmax.f32 %v466_v24, 0.0 }
 0x17a   : > { %v491_v31 = vmax.f32 %v421_v27, 0.0  ;;  %v499_v32 = vmax.f32 %v461_v28, 0.0  ;;  %v736_v33 = vpop.f32.mrb[4].mxu0  ;;  %v748_v34 = vpop.f32.mrb[4].mxu1 }
 0x17b   : > { %508 = vst [vmem:[%s1310_s7 + $0x18] sm:$0xff] %v492_v29  ;;  %516 = vst [vmem:[%s1310_s7 + $0x58] sm:$0xff] %v500_v30  ;;  %v436_v35 = vadd.f32 %v736_v33, %v655_v8  ;;  %v476_v36 = vadd.f32 %v748_v34, %v655_v8  ;;  %v430_v37 = vpop.f32.mrb[5].mxu0  ;;  %v470_v38 = vpop.f32.mrb[5].mxu1 }
 0x17c   : > { %507 = vst [vmem:[%s1310_s7 + $0x10] sm:$0xff] %v491_v31  ;;  %515 = vst [vmem:[%s1310_s7 + $0x50] sm:$0xff] %v499_v32  ;;  %v431_v39 = vadd.f32 %v655_v8, %v430_v37  ;;  %v471_v40 = vadd.f32 %v655_v8, %v470_v38 }
 0x17d   : > { %v494_v41 = vmax.f32 %v436_v35, 0.0  ;;  %v502_v42 = vmax.f32 %v476_v36, 0.0 }
 0x17e   : > { %v493_v43 = vmax.f32 %v431_v39, 0.0  ;;  %v501_v44 = vmax.f32 %v471_v40, 0.0  ;;  %v739_v45 = vpop.f32.mrb[6].mxu0  ;;  %v751_v46 = vpop.f32.mrb[6].mxu1 }
 0x17f   : > { %510 = vst [vmem:[%s1310_s7 + $0x28] sm:$0xff] %v494_v41  ;;  %518 = vst [vmem:[%s1310_s7 + $0x68] sm:$0xff] %v502_v42  ;;  %v446_v47 = vadd.f32 %v739_v45, %v655_v8  ;;  %v486_v48 = vadd.f32 %v751_v46, %v655_v8  ;;  %v440_v49 = vpop.f32.mrb[7].mxu0  ;;  %v480_v50 = vpop.f32.mrb[7].mxu1 }
 0x180   : > { %509 = vst [vmem:[%s1310_s7 + $0x20] sm:$0xff] %v493_v43  ;;  %517 = vst [vmem:[%s1310_s7 + $0x60] sm:$0xff] %v501_v44  ;;  %v441_v51 = vadd.f32 %v655_v8, %v440_v49  ;;  %v481_v52 = vadd.f32 %v655_v8, %v480_v50 }
 0x181   : > { %v496_v53 = vmax.f32 %v446_v47, 0.0  ;;  %v504_v54 = vmax.f32 %v486_v48, 0.0 }
 0x182   : > { %v495_v55 = vmax.f32 %v441_v51, 0.0  ;;  %v503_v56 = vmax.f32 %v481_v52, 0.0 }
 0x183   : > { %512 = vst [vmem:[%s1310_s7 + $0x38] sm:$0xff] %v496_v53  ;;  %520 = vst [vmem:[%s1310_s7 + $0x78] sm:$0xff] %v504_v54 }
 0x184   : > { %511 = vst [vmem:[%s1310_s7 + $0x30] sm:$0xff] %v495_v55  ;;  %519 = vst [vmem:[%s1310_s7 + $0x70] sm:$0xff] %v503_v56 }
 0x185   : > { %967 = shalt.err (!%p964_p6)
}
 0x186   : > { %s968_s0 = scalar_lea.hbm %s1329_s5, 2048  ;;  %s972_s11 = scalar_lea.hbm %s1383_s4, 4096 }
 0x187   : > { %p969_p8 = scmp.ne.s32.totalorder %s1329_s5, %s968_s0  ;;  %p973_p4 = scmp.lt.u32.totalorder %s1329_s5, %s1383_s4 }
 0x188   : > { %p974_p11 = scmp.lt.u32.totalorder %s972_s11, %s968_s0  ;;  %p976_p3 = scmp.lt.u32.totalorder %s968_s0, %s1329_s5 }
 0x189   : > { %p970_p10 = pnand %p969_p8, %p1157_p12 }
 0x18a   : > { %p975_p13 = por %p974_p11, %p973_p4 }
 0x18b   : > { %p971_p0 = pneg %p970_p10 }
 0x18c   : > { %p977_p7 = por %p976_p3, %p975_p13 }
 0x18e   : > { %p978_p9 = pnand %p977_p7, %p971_p0 }
 0x190   : > { %981 = shalt.err (!%p978_p9)
}
 0x191   : > { %s1036_s12 = smov 128   ;;  %s1037_s21 = smov 8  }
 0x192   : > { %808 = dma.vmem_to_hbm [thread:$0]  (%p1157_p12), %s1331_s28, 2048, %s1329_s5, %s522_s10, %s1036_s12, %s1036_s12, %s1037_s21  }
 0x193 PF: > { %s550_s13 = sand.u32 1, %s1016_s15   ;;  %p1409_p1 = scmp.ne.s32.totalorder %s1394_s22, 0 }
 0x194   : > { %p1410_p5 = scmp.ge.s32.totalorder %s1028_s18, 2  ;;  %s551_s7 = scalar_lea.sflag [#allocation4], %s550_s13 }
 0x196   : > { %p822_p2 = pnand %p1410_p5, %p1409_p1 }
 0x198   : > { %1011 = dma.done.wait (!%p822_p2), %s551_s7, 2048  }
 0x199   : > { %1013 = vsyncadd (!%p822_p2), %s551_s7, 4294965248  ;;  %s1411_s8 = sld [smem:[#allocation13_spill]]  ;;  %p20_p6 = scmp.ge.s32.totalorder %s1119_s27, 4  }
 0x19a   : > { %s1412_s15 = smov %s1020_s16  ;;  %s1413_s16 = smov %s1024_s17 }
 0x19b   : > { %s1415_s18 = smov %s1119_s27  ;;  %22 = sbr.rel (!%p20_p6) target bundleno = 10 (0xa), region = 98 }
 0x19f   : > { %s1414_s17 = smov %s1411_s8 }
 0x1a2   :  { %556 = vsyncpa [#allocation3], 1 }
 0x1a3   :  { %558 = vsyncpa [#allocation3 + $0x1], 1 }
 0x1a4   :  { %559 = vsyncpa [#allocation6], 1 }
 0x1a5   :  { %561 = vsyncpa [#allocation6 + $0x1], 1 }
 0x1a6   :  { %562 = vsyncpa [#allocation4], 1 }
 0x1a7   :  { %564 = vsyncpa [#allocation4 + $0x1], 1 }

</bundles_post_ra>
